<compile_context>
chip_gen: v6e
topology: v6e:2x2x1
jax: 0.10.0
libtpu: 0.0.40
codegen_flags: <defaults>
</compile_context>

<pallas_src>
import jax
import jax.numpy as jnp
from jax.experimental import pallas as pl
from jax.experimental.pallas import tpu as pltpu


# --------------------------------------------------------------------------
# Kernel body (shared by the grid-less and the batch-tiled paths).
# Operands (transposed / torch-natural layouts):
#   xT_ref  : (D, TB)   input tile, batch on lanes
#   w1_ref  : (H, D)    fc1 weight (torch layout: out x in)
#   b_ref   : (H, 2)    stacked biases, column 0 = b1, column 1 = b2 (f32)
#   w2_ref  : (H, H)    fc2 weight
#   outT_ref: (H, TB)   output tile, batch on lanes
# --------------------------------------------------------------------------
def vehicle_encoder_kernel(xT_ref, w1_ref, b_ref, w2_ref, outT_ref):
    # fc1 + ReLU: (H, D) @ (D, TB) -> (H, TB), f32 accumulation on the MXU.
    h = jnp.dot(w1_ref[...], xT_ref[...], preferred_element_type=jnp.float32)
    h = jnp.maximum(h + b_ref[:, 0:1], 0.0)           # f32 epilogue (v5e-safe)
    # fc2 + ReLU: (H, H) @ (H, TB) -> (H, TB). Cast h to the weight dtype so a
    # bf16-streamed run keeps the MXU in bf16 (no-op in the f32 path).
    y = jnp.dot(w2_ref[...], h.astype(w2_ref.dtype),
                preferred_element_type=jnp.float32)
    y = jnp.maximum(y + b_ref[:, 1:2], 0.0)           # f32 epilogue
    outT_ref[...] = y.astype(outT_ref.dtype)


def _round_up(v, m):
    return ((v + m - 1) // m) * m


def _pick_tb(batch, tb):
    """Pick the batch tile: as large as requested, lane-multiple (128), but
    keep >= 2 grid steps when the batch allows it so dimension_semantics
    ("parallel",) can shard across v7x's two TensorCores."""
    tb = min(tb, _round_up(batch, 128))
    if batch > 128:
        tb = min(tb, _round_up(pl.cdiv(batch, 2), 128))
    return max(128, _round_up(tb, 128))


def _forward_whole(xT, w1, b, w2, *, batch, hidden, out_dtype):
    """Tiny-batch path: single grid-less invocation, every operand one whole
    VMEM block (no grid, no double-buffering)."""
    vmem = pl.BlockSpec(memory_space=pltpu.MemorySpace.VMEM)
    return pl.pallas_call(
        vehicle_encoder_kernel,
        out_shape=jax.ShapeDtypeStruct((hidden, batch), out_dtype),
        in_specs=[vmem, vmem, vmem, vmem],
        out_specs=vmem,
    )(xT, w1, b, w2)


def _forward_tiled(xT, w1, b, w2, *, batch, in_dim, hidden, tb, out_dtype):
    """Large-batch path: stream lane-dense (.., tb) batch tiles of xT / outT,
    keep W1 / biases / W2 resident across grid steps."""
    out_bytes = jnp.dtype(out_dtype).itemsize
    cost = pl.CostEstimate(
        flops=2 * batch * (in_dim + hidden) * hidden,
        transcendentals=0,
        bytes_accessed=(batch * in_dim * xT.dtype.itemsize
                        + batch * hidden * out_bytes
                        + w1.size * w1.dtype.itemsize
                        + w2.size * w2.dtype.itemsize
                        + b.size * 4),
    )
    return pl.pallas_call(
        vehicle_encoder_kernel,
        out_shape=jax.ShapeDtypeStruct((hidden, batch), out_dtype),
        grid=(pl.cdiv(batch, tb),),
        in_specs=[
            pl.BlockSpec((in_dim, tb), lambda i: (0, i)),   # stream xT tiles
            pl.BlockSpec((hidden, in_dim), lambda i: (0, 0)),  # resident W1
            pl.BlockSpec((hidden, 2), lambda i: (0, 0)),       # resident biases
            pl.BlockSpec((hidden, hidden), lambda i: (0, 0)),  # resident W2
        ],
        out_specs=pl.BlockSpec((hidden, tb), lambda i: (0, i)),
        compiler_params=pltpu.CompilerParams(
            dimension_semantics=("parallel",)),  # shards grid across v7x TCs
        cost_estimate=cost,
    )(xT, w1, b, w2)


def vehicle_encoder_forward(x, w1, b1, w2, b2, *, tb=4096, stream_dtype=None,
                            out_dtype=jnp.float32):
    """VehicleEncoder forward.

    x : (B, input_dim) activations.
    w1: (hidden_dim, input_dim), b1: (hidden_dim,)   -- torch fc1 layout.
    w2: (hidden_dim, hidden_dim), b2: (hidden_dim,)  -- torch fc2 layout.
    stream_dtype: e.g. jnp.bfloat16 on v6e/v7x to halve streamed HBM traffic
                  (accumulation and the bias/ReLU epilogue stay f32).
    Returns (B, hidden_dim) in out_dtype.
    """
    batch, in_dim = x.shape
    hidden = w1.shape[0]

    b = jnp.stack([b1, b2], axis=1).astype(jnp.float32)    # (H, 2), f32 epilogue
    xT = x.T                                               # layout plumbing
    if stream_dtype is not None:
        xT = xT.astype(stream_dtype)
        w1 = w1.astype(stream_dtype)
        w2 = w2.astype(stream_dtype)

    if batch <= 256:
        # TODO(synk): at this size the standalone call is overhead-bound; in a
        # real PPO loop fuse the encoder into the surrounding policy kernel or
        # keep weights resident across calls instead of re-DMAing them.
        yT = _forward_whole(xT, w1, b, w2, batch=batch, hidden=hidden,
                            out_dtype=out_dtype)
    else:
        tb_eff = _pick_tb(batch, tb)
        yT = _forward_tiled(xT, w1, b, w2, batch=batch, in_dim=in_dim,
                            hidden=hidden, tb=tb_eff, out_dtype=out_dtype)
    return yT.T                                            # back to (B, H)


def init_vehicle_encoder_params(key, input_dim, hidden_dim):
    """torch.nn.Linear-style init (uniform +-1/sqrt(fan_in)), torch layouts."""
    k1, k2, k3, k4 = jax.random.split(key, 4)
    bound1 = 1.0 / jnp.sqrt(input_dim)
    bound2 = 1.0 / jnp.sqrt(hidden_dim)
    w1 = jax.random.uniform(k1, (hidden_dim, input_dim), jnp.float32, -bound1, bound1)
    b1 = jax.random.uniform(k2, (hidden_dim,), jnp.float32, -bound1, bound1)
    w2 = jax.random.uniform(k3, (hidden_dim, hidden_dim), jnp.float32, -bound2, bound2)
    b2 = jax.random.uniform(k4, (hidden_dim,), jnp.float32, -bound2, bound2)
    return w1, b1, w2, b2


if __name__ == "__main__":
    input_dim, hidden_dim = 16, 32

    key = jax.random.PRNGKey(0)
    kp, kx_small, kx_big = jax.random.split(key, 3)
    w1, b1, w2, b2 = init_vehicle_encoder_params(kp, input_dim, hidden_dim)

    def ref_fwd(xv):
        h = jnp.maximum(xv @ w1.T + b1, 0.0)
        return jnp.maximum(h @ w2.T + b2, 0.0)

    # --- tiny batch: grid-less whole-array path ---
    x_small = jax.random.normal(kx_small, (8, input_dim), jnp.float32)
    out_small = jax.block_until_ready(
        vehicle_encoder_forward(x_small, w1, b1, w2, b2))
    assert out_small.shape == (8, hidden_dim)
    assert jnp.allclose(out_small, ref_fwd(x_small), atol=1e-5, rtol=1e-5)

    # --- larger batch: lane-dense batch-tiled path (>=2 grid steps) ---
    x_big = jax.random.normal(kx_big, (1024, input_dim), jnp.float32)
    out_big = jax.block_until_ready(
        vehicle_encoder_forward(x_big, w1, b1, w2, b2))
    assert out_big.shape == (1024, hidden_dim)
    assert jnp.allclose(out_big, ref_fwd(x_big), atol=1e-4, rtol=1e-4)

    # --- bf16 streaming (v6e/v7x bandwidth lever), f32 accumulation/output ---
    out_bf16 = jax.block_until_ready(
        vehicle_encoder_forward(x_big, w1, b1, w2, b2,
                                stream_dtype=jnp.bfloat16))
    assert out_bf16.shape == (1024, hidden_dim)
    assert jnp.allclose(out_bf16, ref_fwd(x_big), atol=1e-1, rtol=1e-1)

    print("KERNEL_OK")
</pallas_src>

<mosaic_0001>
module attributes {stable_mosaic.version = 11 : i64} {
  func.func @vehicle_encoder_kernel(%arg0: memref<16x8xf32, #tpu.memory_space<vmem>>, %arg1: memref<32x16xf32, #tpu.memory_space<vmem>>, %arg2: memref<32x2xf32, #tpu.memory_space<vmem>>, %arg3: memref<32x32xf32, #tpu.memory_space<vmem>>, %arg4: memref<32x8xf32, #tpu.memory_space<vmem>>) attributes {dimension_semantics = [], scalar_prefetch = 0 : i64, scratch_operands = 0 : i64, tpu.core_type = #tpu.core_type<tc>} {
    %c0 = arith.constant 0 : index
    %c0_0 = arith.constant 0 : index
    %0 = vector.load %arg1[%c0, %c0_0] : memref<32x16xf32, #tpu.memory_space<vmem>>, vector<32x16xf32>
    %c0_1 = arith.constant 0 : index
    %c0_2 = arith.constant 0 : index
    %1 = vector.load %arg0[%c0_1, %c0_2] : memref<16x8xf32, #tpu.memory_space<vmem>>, vector<16x8xf32>
    %cst = arith.constant dense<0.000000e+00> : vector<32x8xf32>
    %2 = tpu.matmul %0, %1, %cst {dimension_numbers = #tpu.dot_dimension_numbers<[1], [0], [0], [1], [0, 0, 1, 1], [], []>} : vector<32x16xf32>, vector<16x8xf32>, vector<32x8xf32> -> vector<32x8xf32>
    %c0_3 = arith.constant 0 : index
    %c0_4 = arith.constant 0 : index
    %3 = vector.load %arg2[%c0_3, %c0_4] : memref<32x2xf32, #tpu.memory_space<vmem>>, vector<32x1xf32>
    %4 = vector.broadcast %3 : vector<32x1xf32> to vector<32x8xf32>
    %5 = arith.addf %2, %4 : vector<32x8xf32>
    %cst_5 = arith.constant 0.000000e+00 : f32
    %6 = vector.broadcast %cst_5 : f32 to vector<32x8xf32>
    %7 = arith.maximumf %5, %6 : vector<32x8xf32>
    %c0_6 = arith.constant 0 : index
    %c0_7 = arith.constant 0 : index
    %8 = vector.load %arg3[%c0_6, %c0_7] : memref<32x32xf32, #tpu.memory_space<vmem>>, vector<32x32xf32>
    %cst_8 = arith.constant dense<0.000000e+00> : vector<32x8xf32>
    %9 = tpu.matmul %8, %7, %cst_8 {dimension_numbers = #tpu.dot_dimension_numbers<[1], [0], [0], [1], [0, 0, 1, 1], [], []>} : vector<32x32xf32>, vector<32x8xf32>, vector<32x8xf32> -> vector<32x8xf32>
    %c0_9 = arith.constant 0 : index
    %c1 = arith.constant 1 : index
    %10 = vector.load %arg2[%c0_9, %c1] : memref<32x2xf32, #tpu.memory_space<vmem>>, vector<32x1xf32>
    %11 = vector.broadcast %10 : vector<32x1xf32> to vector<32x8xf32>
    %12 = arith.addf %9, %11 : vector<32x8xf32>
    %cst_10 = arith.constant 0.000000e+00 : f32
    %13 = vector.broadcast %cst_10 : f32 to vector<32x8xf32>
    %14 = arith.maximumf %12, %13 : vector<32x8xf32>
    %c0_11 = arith.constant 0 : index
    %c0_12 = arith.constant 0 : index
    %15 = vector.load %arg4[%c0_11, %c0_12] : memref<32x8xf32, #tpu.memory_space<vmem>>, vector<32x8xf32>
    tpu.vector_store %arg4[%c0_11, %c0_12], %14 {strides = array<i32>} : memref<32x8xf32, #tpu.memory_space<vmem>>, vector<32x8xf32>,
    return
  }
}

</mosaic_0001>

<bundles_post_ra>
// kernel: tpu_custom_call.1
= control target key start
LH: loop header
LB: loop body
LE: loop exit
PB: predicated region body
PF: predicated region fallthrough
CT: control target
= control target key end

     0   :  { %vm47_vm0 = vcmask 130048   ;;  %v332_v3 = vmov 0   ;;  %vm169_vm1 = vcmask 261120   ;;  %v333_v12 = vmov 1   ;;  %s425_s0 = inlined_call_operand.vmem [shape: f32[16,8], index: 0, kind: input, shape index: {}]   ;;  %s426_s1 = inlined_call_operand.vmem [shape: f32[32,16], index: 1, kind: input, shape index: {}]   ;;  %s427_s2 = inlined_call_operand.vmem [shape: f32[32,2], index: 2, kind: input, shape index: {}]   ;;  %s428_s3 = inlined_call_operand.vmem [shape: f32[32,32], index: 3, kind: input, shape index: {}]   ;;  %s429_s4 = inlined_call_operand.vmem [shape: f32[32,8], index: 4, kind: output, shape index: {}]  }
   0x1   :  { %v22_v0 = vld [vmem:[%s425_s0 + $0x8] sm:$0xff]  ;;  %v21_v1 = vld [vmem:[%s425_s0] sm:$0xff]  ;;  %329 = vset.pattern.permute.xlu1 %v332_v3  ;;  %328 = vset.pattern.permute.xlu0 %v332_v3  ;;  %v26_v5 = vld [vmem:[%s427_s2 + $0x18] sm:$0xff]  ;;  %vm271_vm2 = vcmask 64512  }
   0x2   :  { %v17_v2 = vld [vmem:[%s426_s1] sm:$0xff]  ;;  %302 = vmatprep.subr.mxu0 %v22_v0  ;;  %v18_v4 = vld [vmem:[%s426_s1 + $0x8] sm:$0xff]  ;;  %v19_v7 = vld [vmem:[%s426_s1 + $0x10] sm:$0xff]  ;;  %44 = vperm.xlu0 %328, %v26_v5  }
   0x3   :  { %306 = vmatprep.mubr.msk.f32.mxu0 %vm47_vm0, %v17_v2  ;;  %303 = vmatpush3.msra.mxu0 %v22_v0  ;;  %v24_v6 = vld [vmem:[%s427_s2 + $0x8] sm:$0xff]  ;;  %v25_v8 = vld [vmem:[%s427_s2 + $0x10] sm:$0xff]  ;;  %v23_v9 = vld [vmem:[%s427_s2] sm:$0xff] }
   0x4   :  { %304 = vmatprep.subr.mxu0 %v21_v1  ;;  %34 = vperm.xlu1 %329, %v24_v6   ;;  %v20_v10 = vld [vmem:[%s426_s1 + $0x18] sm:$0xff]  ;;  %v149_v11 = vld [vmem:[%s428_s3] sm:$0xff]  ;;  %v150_v29 = vld [vmem:[%s428_s3 + $0x8] sm:$0xff] }
   0x5   :  { %305 = vmatpush3.msra.mxu0 %v21_v1  ;;  %320 = vmatprep.mubr.msk.f32.mxu1 %vm169_vm1, %v149_v11  ;;  %v151_v30 = vld [vmem:[%s428_s3 + $0x10] sm:$0xff]  ;;  %v152_v31 = vld [vmem:[%s428_s3 + $0x18] sm:$0xff] }
   0x6   :  { %307 = vmatmul.mubr.msk.f32.vlgmr.msra.gmra.mxu0 %vm47_vm0, %v18_v4  ;;  %39 = vperm.xlu0 %328, %v25_v8  }
   0x7   :  { %309 = vmatprep.mubr.msk.f32.mxu0 %vm47_vm0, %v19_v7 }
   0x8   :  { %29 = vperm.xlu1 %329, %v23_v9  }
   0xa   :  { %310 = vmatmul.mubr.msk.f32.gmra.mxu0 %vm47_vm0, %v20_v10  ;;  %330 = vset.pattern.permute.xlu0 %v333_v12 }
   0xb   :  { %154 = vperm.xlu0 %330, %v23_v9  }
   0xc   :  { %331 = vset.pattern.permute.xlu1 %v333_v12 }
   0xd   :  { %158 = vperm.xlu1 %331, %v24_v6  }
   0xf   :  { %166 = vperm.xlu0 %330, %v26_v5  }
  0x11   :  { %162 = vperm.xlu1 %331, %v25_v8  }
  0x7d   :  { %v45_v13 = vpop.permute.xlu0 %44 }
  0x7f   :  { %v35_v14 = vpop.permute.xlu1 %34 }
  0x81   :  { %v40_v18 = vpop.permute.xlu0 %39 }
  0x83   :  { %v30_v20 = vpop.permute.xlu1 %29 }
  0x86   :  { %v155_v32 = vpop.permute.xlu0 %154 }
  0x88   :  { %v159_v33 = vpop.permute.xlu1 %158 }
  0x8a   :  { %v167_v39 = vpop.permute.xlu0 %166 }
  0x8c   :  { %v163_v43 = vpop.permute.xlu1 %162 }
  0xc6   :  { %v308_v15 = vpop.f32.mrf.mxu0 }
  0xc7   :  { %v132_v22 = vadd.f32 %v308_v15, %v35_v14 }
  0xc8   :  { %v126_v16 = vpop.f32.mrf.mxu0 }
  0xc9   :  { %v127_v25 = vadd.f32 %v126_v16, %v30_v20  ;;  %v146_v27 = vmax.f32 %v132_v22, 0.0 }
  0xca   :  { %v311_v17 = vpop.f32.mrf.mxu0 }
  0xcb   :  { %v142_v19 = vadd.f32 %v311_v17, %v45_v13  ;;  %v145_v28 = vmax.f32 %v127_v25, 0.0 }
  0xcc   :  { %v136_v21 = vpop.f32.mrf.mxu0 }
  0xcd   :  { %v148_v23 = vmax.f32 %v142_v19, 0.0  ;;  %v137_v24 = vadd.f32 %v136_v21, %v40_v18 }
  0xcf   :  { %v147_v26 = vmax.f32 %v137_v24, 0.0  ;;  %312 = vmatprep.subr.mxu1 %v148_v23 }
  0xd0   :  { %313 = vmatpush3.msra.mxu1 %v148_v23 }
  0xd1   :  { %314 = vmatprep.subr.mxu1 %v147_v26 }
  0xd2   :  { %315 = vmatpush3.msra.mxu1 %v147_v26 }
  0xd3   :  { %316 = vmatprep.subr.mxu1 %v146_v27 }
  0xd4   :  { %317 = vmatpush3.msra.mxu1 %v146_v27 }
  0xd5   :  { %318 = vmatprep.subr.mxu1 %v145_v28 }
  0xd6   :  { %319 = vmatpush3.msra.mxu1 %v145_v28 }
  0xd7   :  { %321 = vmatmul.mubr.msk.f32.vlgmr.msra.gmra.mxu1 %vm169_vm1, %v150_v29 }
  0xd8   :  { %323 = vmatprep.mubr.msk.f32.mxu1 %vm169_vm1, %v151_v30 }
  0xdb   :  { %324 = vmatmul.mubr.msk.f32.gmra.mxu1 %vm169_vm1, %v152_v31 }
 0x197   :  { %v322_v34 = vpop.f32.mrf.mxu1 }
 0x198   :  { %v254_v35 = vadd.f32 %v322_v34, %v159_v33 }
 0x199   :  { %v248_v36 = vpop.f32.mrf.mxu1 }
 0x19a   :  { %v268_v37 = vmax.f32 %v254_v35, 0.0  ;;  %v249_v38 = vadd.f32 %v248_v36, %v155_v32 }
 0x19b   :  { %v325_v40 = vpop.f32.mrf.mxu1 }
 0x19c   :  { %273 = vst.msk [vmem:[%s429_s4 + $0x8] sm:$0xff] %vm271_vm2, %v268_v37  ;;  %v267_v41 = vmax.f32 %v249_v38, 0.0  ;;  %v264_v42 = vadd.f32 %v325_v40, %v167_v39 }
 0x19d   :  { %v258_v44 = vpop.f32.mrf.mxu1 }
 0x19e   :  { %272 = vst.msk [vmem:[%s429_s4] sm:$0xff] %vm271_vm2, %v267_v41  ;;  %v270_v45 = vmax.f32 %v264_v42, 0.0  ;;  %v259_v46 = vadd.f32 %v258_v44, %v163_v43 }
 0x1a0   :  { %275 = vst.msk [vmem:[%s429_s4 + $0x18] sm:$0xff] %vm271_vm2, %v270_v45  ;;  %v269_v47 = vmax.f32 %v259_v46, 0.0 }
 0x1a2   :  { %274 = vst.msk [vmem:[%s429_s4 + $0x10] sm:$0xff] %vm271_vm2, %v269_v47 }

</bundles_post_ra>
